<compile_context>
chip_gen: v5e
topology: v5e:2x2
jax: 0.10.0
libtpu: 0.0.40
codegen_flags: <defaults>
</compile_context>

<pallas_src>
import functools

import jax
import jax.numpy as jnp
from jax.experimental import pallas as pl
from jax.experimental.pallas import tpu as pltpu


def _query_attention_kernel(x_ref, q_ref, w_ref, b_ref, o_ref, *,
                            B, N, P, num_heads, scale):
    # x_ref: (B*N, C)   all batch tokens, flattened
    # q_ref: (P, C)     learned queries (shared across batch)
    # w_ref: (C, 3C)    fused [Wk | Wv | Wp], pre-transposed so y = x @ W + b
    # b_ref: (1, 3C)    fused [bk | bv | bp]
    # o_ref: (B*P, C)   output (reshaped to (B, P, C) in the wrapper)
    C = q_ref.shape[1]
    hd = C // num_heads

    w = w_ref[...]                                                        # (C, 3C)
    b = b_ref[...]                                                        # (1, 3C)

    # Fused K/V projection for the entire batch: one MXU weight push.
    kv = jnp.dot(x_ref[...], w[:, :2 * C],
                 preferred_element_type=jnp.float32) + b[:, :2 * C]       # (B*N, 2C)

    # Fold the attention scale into q once (exact for power-of-two head dims; hd = 16).
    q = q_ref[...] * scale                                                # (P, C)

    # B and num_heads are tiny & static -> fully unrolled; every dot is a plain 2-D matmul.
    # The context never leaves vregs: per-head outputs are concatenated along the lane axis,
    # batches stacked along sublanes, then fed directly into the output projection.
    batch_rows = []
    for bi in range(B):
        head_cols = []
        for h in range(num_heads):
            qh = q[:, h * hd:(h + 1) * hd]                                # (P, hd)
            kh = kv[bi * N:(bi + 1) * N, h * hd:(h + 1) * hd]             # (N, hd)
            vh = kv[bi * N:(bi + 1) * N, C + h * hd:C + (h + 1) * hd]     # (N, hd)

            # s = qh @ kh.T without materializing the transpose.
            s = jax.lax.dot_general(qh, kh, (((1,), (1,)), ((), ())),
                                    preferred_element_type=jnp.float32)   # (P, N)
            s = s - jnp.max(s, axis=-1, keepdims=True)
            p = jnp.exp(s)
            # Exact divide: no slot is saturated here, so the approx EUP reciprocal
            # would only cost accuracy.
            attn = p / jnp.sum(p, axis=-1, keepdims=True)
            # attn_drop has p=0.0 in this config -> identity.
            # TODO(synk): add dropout (pltpu.prng_seed / prng_random_bits) if attn_drop > 0.
            head_cols.append(jnp.dot(attn, vh,
                                     preferred_element_type=jnp.float32))  # (P, hd)
        batch_rows.append(jnp.concatenate(head_cols, axis=1))              # (P, C)
    ctx = jnp.concatenate(batch_rows, axis=0)                              # (B*P, C) in vregs

    # Output projection over the whole batch, single store.
    out = jnp.dot(ctx, w[:, 2 * C:],
                  preferred_element_type=jnp.float32) + b[:, 2 * C:]       # (B*P, C)
    o_ref[...] = out.astype(o_ref.dtype)


def fuse_query_attention_params(wk, bk, wv, bv, wp, bp):
    """Fuse projection weights/biases ONCE at init time into one slab.

    All w* are (C, C) already transposed so y = x @ W + b; all b* are (1, C).
    """
    w_fused = jnp.concatenate([wk, wv, wp], axis=1)   # (C, 3C)
    b_fused = jnp.concatenate([bk, bv, bp], axis=1)   # (1, 3C)
    return w_fused, b_fused


def query_attention(x, q_param, w_fused, b_fused, *, num_heads):
    """x: (B, N, C); q_param: (P, C); w_fused: (C, 3C); b_fused: (1, 3C)."""
    B, N, C = x.shape
    P = q_param.shape[0]
    hd = C // num_heads
    scale = hd ** (-0.5)

    x_flat = x.reshape(B * N, C)                      # contiguous -> free reshape in HBM

    kernel = functools.partial(_query_attention_kernel,
                               B=B, N=N, P=P, num_heads=num_heads, scale=scale)

    # Advisory cost hint for XLA's scheduler around the custom call.
    flops = (2 * (B * N) * C * (2 * C)                    # fused K/V projection
             + B * num_heads * 2 * (2 * P * N * hd)       # QK^T and attn @ V
             + 2 * (B * P) * C * C)                       # output projection
    transcendentals = B * num_heads * P * N               # exp in softmax
    bytes_accessed = 4 * (x_flat.size + q_param.size + w_fused.size
                          + b_fused.size + B * P * C)

    out = pl.pallas_call(
        kernel,
        out_shape=jax.ShapeDtypeStruct((B * P, C), x.dtype),
        in_specs=[pl.BlockSpec(memory_space=pltpu.MemorySpace.VMEM) for _ in range(4)],
        out_specs=pl.BlockSpec(memory_space=pltpu.MemorySpace.VMEM),
        cost_estimate=pl.CostEstimate(flops=flops,
                                      transcendentals=transcendentals,
                                      bytes_accessed=bytes_accessed),
    )(x_flat, q_param, w_fused, b_fused)
    return out.reshape(B, P, C)


def query_attention_ref(x, q_param, wk, bk, wv, bv, wp, bp, *, num_heads):
    """Pure-JAX reference mirroring the PyTorch forward."""
    B, N, C = x.shape
    P = q_param.shape[0]
    hd = C // num_heads
    scale = hd ** (-0.5)
    k = (x @ wk + bk).reshape(B, N, num_heads, hd).transpose(0, 2, 1, 3)
    v = (x @ wv + bv).reshape(B, N, num_heads, hd).transpose(0, 2, 1, 3)
    q = jnp.broadcast_to(q_param[None], (B, P, C)).reshape(B, P, num_heads, hd)
    q = q.transpose(0, 2, 1, 3)
    attn = jnp.einsum('bhpd,bhnd->bhpn', q, k) * scale
    attn = jax.nn.softmax(attn, axis=-1)
    out = jnp.einsum('bhpn,bhnd->bhpd', attn, v)
    out = out.transpose(0, 2, 1, 3).reshape(B, P, C)
    return out @ wp + bp


if __name__ == "__main__":
    # Keep the reference matmuls in full f32 so the comparison isolates kernel error.
    jax.config.update("jax_default_matmul_precision", "highest")

    # Small shapes consistent with the module: embed_dim=32, num_params=4, num_heads=2.
    B, N, C = 2, 8, 32
    num_params, num_heads = 4, 2

    key = jax.random.PRNGKey(0)
    kx, kwk, kbk, kwv, kbv, kwp, kbp = jax.random.split(key, 7)

    x = jax.random.normal(kx, (B, N, C), dtype=jnp.float32)

    # Parameters (deterministic init; q is ones like the PyTorch module).
    q_param = jnp.ones((num_params, C), dtype=jnp.float32)
    scale_init = 1.0 / jnp.sqrt(C)
    # Stored already transposed: y = x @ W + b  (PyTorch Linear is y = x @ W^T + b).
    wk = jax.random.normal(kwk, (C, C), dtype=jnp.float32) * scale_init
    bk = jax.random.normal(kbk, (1, C), dtype=jnp.float32) * 0.1
    wv = jax.random.normal(kwv, (C, C), dtype=jnp.float32) * scale_init
    bv = jax.random.normal(kbv, (1, C), dtype=jnp.float32) * 0.1
    wp = jax.random.normal(kwp, (C, C), dtype=jnp.float32) * scale_init
    bp = jax.random.normal(kbp, (1, C), dtype=jnp.float32) * 0.1

    # Weight fusion happens once at "init time", outside the call path.
    w_fused, b_fused = fuse_query_attention_params(wk, bk, wv, bv, wp, bp)

    out = query_attention(x, q_param, w_fused, b_fused, num_heads=num_heads)
    out = jax.block_until_ready(out)

    ref = query_attention_ref(x, q_param, wk, bk, wv, bv, wp, bp, num_heads=num_heads)
    assert out.shape == (B, num_params, C)
    # Exact softmax divide + f32 MXU accumulation -> tight tolerance.
    assert jnp.allclose(out, ref, atol=1e-4, rtol=1e-4), "Pallas output mismatch vs reference"

    print("KERNEL_OK")
</pallas_src>

<mosaic_0001>
module attributes {stable_mosaic.version = 11 : i64} {
  func.func @_query_attention_kernel(%arg0: memref<16x32xf32, #tpu.memory_space<vmem>>, %arg1: memref<4x32xf32, #tpu.memory_space<vmem>>, %arg2: memref<32x96xf32, #tpu.memory_space<vmem>>, %arg3: memref<1x96xf32, #tpu.memory_space<vmem>>, %arg4: memref<8x32xf32, #tpu.memory_space<vmem>>) attributes {dimension_semantics = [], scalar_prefetch = 0 : i64, scratch_operands = 0 : i64, tpu.core_type = #tpu.core_type<tc>} {
    %c0 = arith.constant 0 : index
    %c0_0 = arith.constant 0 : index
    %0 = vector.load %arg2[%c0, %c0_0] : memref<32x96xf32, #tpu.memory_space<vmem>>, vector<32x96xf32>
    %c0_1 = arith.constant 0 : index
    %c0_2 = arith.constant 0 : index
    %1 = vector.load %arg3[%c0_1, %c0_2] : memref<1x96xf32, #tpu.memory_space<vmem>>, vector<1x96xf32>
    %c0_3 = arith.constant 0 : index
    %c0_4 = arith.constant 0 : index
    %2 = vector.load %arg0[%c0_3, %c0_4] : memref<16x32xf32, #tpu.memory_space<vmem>>, vector<16x32xf32>
    %3 = vector.extract_strided_slice %0 {offsets = [0, 0], sizes = [32, 64], strides = [1, 1]} : vector<32x96xf32> to vector<32x64xf32>
    %cst = arith.constant dense<0.000000e+00> : vector<16x64xf32>
    %4 = tpu.matmul %2, %3, %cst {dimension_numbers = #tpu.dot_dimension_numbers<[1], [0], [0], [1], [0, 0, 1, 1], [], []>, precision = #tpu.contract_precision<fp32>} : vector<16x32xf32>, vector<32x64xf32>, vector<16x64xf32> -> vector<16x64xf32>
    %5 = vector.extract_strided_slice %1 {offsets = [0, 0], sizes = [1, 64], strides = [1, 1]} : vector<1x96xf32> to vector<1x64xf32>
    %6 = vector.broadcast %5 : vector<1x64xf32> to vector<16x64xf32>
    %7 = arith.addf %4, %6 : vector<16x64xf32>
    %c0_5 = arith.constant 0 : index
    %c0_6 = arith.constant 0 : index
    %8 = vector.load %arg1[%c0_5, %c0_6] : memref<4x32xf32, #tpu.memory_space<vmem>>, vector<4x32xf32>
    %cst_7 = arith.constant 2.500000e-01 : f32
    %9 = vector.broadcast %cst_7 : f32 to vector<4x32xf32>
    %10 = arith.mulf %8, %9 : vector<4x32xf32>
    %11 = vector.extract_strided_slice %10 {offsets = [0, 0], sizes = [4, 16], strides = [1, 1]} : vector<4x32xf32> to vector<4x16xf32>
    %12 = vector.extract_strided_slice %7 {offsets = [0, 0], sizes = [8, 16], strides = [1, 1]} : vector<16x64xf32> to vector<8x16xf32>
    %13 = vector.extract_strided_slice %7 {offsets = [0, 32], sizes = [8, 16], strides = [1, 1]} : vector<16x64xf32> to vector<8x16xf32>
    %cst_8 = arith.constant dense<0.000000e+00> : vector<4x8xf32>
    %14 = tpu.matmul %11, %12, %cst_8 {dimension_numbers = #tpu.dot_dimension_numbers<[1], [1], [0], [0], [0, 0, 1, 0], [], []>, precision = #tpu.contract_precision<fp32>} : vector<4x16xf32>, vector<8x16xf32>, vector<4x8xf32> -> vector<4x8xf32>
    %cst_9 = arith.constant dense<0xFF800000> : vector<4xf32>
    %15 = vector.multi_reduction <maximumf>, %14, %cst_9 [1] : vector<4x8xf32> to vector<4xf32>
    %16 = vector.shape_cast %15 : vector<4xf32> to vector<4x1xf32>
    %17 = vector.broadcast %16 : vector<4x1xf32> to vector<4x8xf32>
    %18 = arith.subf %14, %17 : vector<4x8xf32>
    %19 = math.exp %18 : vector<4x8xf32>
    %cst_10 = arith.constant dense<0.000000e+00> : vector<4xf32>
    %20 = vector.multi_reduction <add>, %19, %cst_10 [1] : vector<4x8xf32> to vector<4xf32>
    %21 = vector.shape_cast %20 : vector<4xf32> to vector<4x1xf32>
    %22 = vector.broadcast %21 : vector<4x1xf32> to vector<4x8xf32>
    %23 = arith.divf %19, %22 : vector<4x8xf32>
    %cst_11 = arith.constant dense<0.000000e+00> : vector<4x16xf32>
    %24 = tpu.matmul %23, %13, %cst_11 {dimension_numbers = #tpu.dot_dimension_numbers<[1], [0], [0], [1], [0, 0, 1, 1], [], []>, precision = #tpu.contract_precision<fp32>} : vector<4x8xf32>, vector<8x16xf32>, vector<4x16xf32> -> vector<4x16xf32>
    %25 = vector.extract_strided_slice %10 {offsets = [0, 16], sizes = [4, 16], strides = [1, 1]} : vector<4x32xf32> to vector<4x16xf32>
    %26 = vector.extract_strided_slice %7 {offsets = [0, 16], sizes = [8, 16], strides = [1, 1]} : vector<16x64xf32> to vector<8x16xf32>
    %27 = vector.extract_strided_slice %7 {offsets = [0, 48], sizes = [8, 16], strides = [1, 1]} : vector<16x64xf32> to vector<8x16xf32>
    %cst_12 = arith.constant dense<0.000000e+00> : vector<4x8xf32>
    %28 = tpu.matmul %25, %26, %cst_12 {dimension_numbers = #tpu.dot_dimension_numbers<[1], [1], [0], [0], [0, 0, 1, 0], [], []>, precision = #tpu.contract_precision<fp32>} : vector<4x16xf32>, vector<8x16xf32>, vector<4x8xf32> -> vector<4x8xf32>
    %cst_13 = arith.constant dense<0xFF800000> : vector<4xf32>
    %29 = vector.multi_reduction <maximumf>, %28, %cst_13 [1] : vector<4x8xf32> to vector<4xf32>
    %30 = vector.shape_cast %29 : vector<4xf32> to vector<4x1xf32>
    %31 = vector.broadcast %30 : vector<4x1xf32> to vector<4x8xf32>
    %32 = arith.subf %28, %31 : vector<4x8xf32>
    %33 = math.exp %32 : vector<4x8xf32>
    %cst_14 = arith.constant dense<0.000000e+00> : vector<4xf32>
    %34 = vector.multi_reduction <add>, %33, %cst_14 [1] : vector<4x8xf32> to vector<4xf32>
    %35 = vector.shape_cast %34 : vector<4xf32> to vector<4x1xf32>
    %36 = vector.broadcast %35 : vector<4x1xf32> to vector<4x8xf32>
    %37 = arith.divf %33, %36 : vector<4x8xf32>
    %cst_15 = arith.constant dense<0.000000e+00> : vector<4x16xf32>
    %38 = tpu.matmul %37, %27, %cst_15 {dimension_numbers = #tpu.dot_dimension_numbers<[1], [0], [0], [1], [0, 0, 1, 1], [], []>, precision = #tpu.contract_precision<fp32>} : vector<4x8xf32>, vector<8x16xf32>, vector<4x16xf32> -> vector<4x16xf32>
    %39 = tpu.concatenate %24, %38 in 1 : vector<4x16xf32>, vector<4x16xf32> -> vector<4x32xf32>
    %40 = vector.extract_strided_slice %10 {offsets = [0, 0], sizes = [4, 16], strides = [1, 1]} : vector<4x32xf32> to vector<4x16xf32>
    %41 = vector.extract_strided_slice %7 {offsets = [8, 0], sizes = [8, 16], strides = [1, 1]} : vector<16x64xf32> to vector<8x16xf32>
    %42 = vector.extract_strided_slice %7 {offsets = [8, 32], sizes = [8, 16], strides = [1, 1]} : vector<16x64xf32> to vector<8x16xf32>
    %cst_16 = arith.constant dense<0.000000e+00> : vector<4x8xf32>
    %43 = tpu.matmul %40, %41, %cst_16 {dimension_numbers = #tpu.dot_dimension_numbers<[1], [1], [0], [0], [0, 0, 1, 0], [], []>, precision = #tpu.contract_precision<fp32>} : vector<4x16xf32>, vector<8x16xf32>, vector<4x8xf32> -> vector<4x8xf32>
    %cst_17 = arith.constant dense<0xFF800000> : vector<4xf32>
    %44 = vector.multi_reduction <maximumf>, %43, %cst_17 [1] : vector<4x8xf32> to vector<4xf32>
    %45 = vector.shape_cast %44 : vector<4xf32> to vector<4x1xf32>
    %46 = vector.broadcast %45 : vector<4x1xf32> to vector<4x8xf32>
    %47 = arith.subf %43, %46 : vector<4x8xf32>
    %48 = math.exp %47 : vector<4x8xf32>
    %cst_18 = arith.constant dense<0.000000e+00> : vector<4xf32>
    %49 = vector.multi_reduction <add>, %48, %cst_18 [1] : vector<4x8xf32> to vector<4xf32>
    %50 = vector.shape_cast %49 : vector<4xf32> to vector<4x1xf32>
    %51 = vector.broadcast %50 : vector<4x1xf32> to vector<4x8xf32>
    %52 = arith.divf %48, %51 : vector<4x8xf32>
    %cst_19 = arith.constant dense<0.000000e+00> : vector<4x16xf32>
    %53 = tpu.matmul %52, %42, %cst_19 {dimension_numbers = #tpu.dot_dimension_numbers<[1], [0], [0], [1], [0, 0, 1, 1], [], []>, precision = #tpu.contract_precision<fp32>} : vector<4x8xf32>, vector<8x16xf32>, vector<4x16xf32> -> vector<4x16xf32>
    %54 = vector.extract_strided_slice %10 {offsets = [0, 16], sizes = [4, 16], strides = [1, 1]} : vector<4x32xf32> to vector<4x16xf32>
    %55 = vector.extract_strided_slice %7 {offsets = [8, 16], sizes = [8, 16], strides = [1, 1]} : vector<16x64xf32> to vector<8x16xf32>
    %56 = vector.extract_strided_slice %7 {offsets = [8, 48], sizes = [8, 16], strides = [1, 1]} : vector<16x64xf32> to vector<8x16xf32>
    %cst_20 = arith.constant dense<0.000000e+00> : vector<4x8xf32>
    %57 = tpu.matmul %54, %55, %cst_20 {dimension_numbers = #tpu.dot_dimension_numbers<[1], [1], [0], [0], [0, 0, 1, 0], [], []>, precision = #tpu.contract_precision<fp32>} : vector<4x16xf32>, vector<8x16xf32>, vector<4x8xf32> -> vector<4x8xf32>
    %cst_21 = arith.constant dense<0xFF800000> : vector<4xf32>
    %58 = vector.multi_reduction <maximumf>, %57, %cst_21 [1] : vector<4x8xf32> to vector<4xf32>
    %59 = vector.shape_cast %58 : vector<4xf32> to vector<4x1xf32>
    %60 = vector.broadcast %59 : vector<4x1xf32> to vector<4x8xf32>
    %61 = arith.subf %57, %60 : vector<4x8xf32>
    %62 = math.exp %61 : vector<4x8xf32>
    %cst_22 = arith.constant dense<0.000000e+00> : vector<4xf32>
    %63 = vector.multi_reduction <add>, %62, %cst_22 [1] : vector<4x8xf32> to vector<4xf32>
    %64 = vector.shape_cast %63 : vector<4xf32> to vector<4x1xf32>
    %65 = vector.broadcast %64 : vector<4x1xf32> to vector<4x8xf32>
    %66 = arith.divf %62, %65 : vector<4x8xf32>
    %cst_23 = arith.constant dense<0.000000e+00> : vector<4x16xf32>
    %67 = tpu.matmul %66, %56, %cst_23 {dimension_numbers = #tpu.dot_dimension_numbers<[1], [0], [0], [1], [0, 0, 1, 1], [], []>, precision = #tpu.contract_precision<fp32>} : vector<4x8xf32>, vector<8x16xf32>, vector<4x16xf32> -> vector<4x16xf32>
    %68 = tpu.concatenate %53, %67 in 1 : vector<4x16xf32>, vector<4x16xf32> -> vector<4x32xf32>
    %69 = tpu.concatenate %39, %68 in 0 : vector<4x32xf32>, vector<4x32xf32> -> vector<8x32xf32>
    %70 = vector.extract_strided_slice %0 {offsets = [0, 64], sizes = [32, 32], strides = [1, 1]} : vector<32x96xf32> to vector<32x32xf32>
    %cst_24 = arith.constant dense<0.000000e+00> : vector<8x32xf32>
    %71 = tpu.matmul %69, %70, %cst_24 {dimension_numbers = #tpu.dot_dimension_numbers<[1], [0], [0], [1], [0, 0, 1, 1], [], []>, precision = #tpu.contract_precision<fp32>} : vector<8x32xf32>, vector<32x32xf32>, vector<8x32xf32> -> vector<8x32xf32>
    %72 = vector.extract_strided_slice %1 {offsets = [0, 64], sizes = [1, 32], strides = [1, 1]} : vector<1x96xf32> to vector<1x32xf32>
    %73 = vector.broadcast %72 : vector<1x32xf32> to vector<8x32xf32>
    %74 = arith.addf %71, %73 : vector<8x32xf32>
    %c0_25 = arith.constant 0 : index
    %c0_26 = arith.constant 0 : index
    %75 = vector.load %arg4[%c0_25, %c0_26] : memref<8x32xf32, #tpu.memory_space<vmem>>, vector<8x32xf32>
    tpu.vector_store %arg4[%c0_25, %c0_26], %74 {strides = array<i32>} : memref<8x32xf32, #tpu.memory_space<vmem>>, vector<8x32xf32>,
    return
  }
}

</mosaic_0001>

<bundles_post_ra>
// kernel: tpu_custom_call.1
= control target key start
LH: loop header
LB: loop body
LE: loop exit
PB: predicated region body
PF: predicated region fallthrough
CT: control target
= control target key end

     0   :  { %9 = vsyncpa [#allocation3], 0  ;;  %s2203_s0 = inlined_call_operand.hbm [shape: f32[16,32], index: 0, kind: input, shape index: {}]   ;;  %s2204_s1 = inlined_call_operand.hbm [shape: f32[4,32], index: 1, kind: input, shape index: {}]   ;;  %s2205_s2 = inlined_call_operand.hbm [shape: f32[32,96], index: 2, kind: input, shape index: {}]   ;;  %s2206_s3 = inlined_call_operand.vmem [shape: f32[1,96], index: 3, kind: input, shape index: {}]   ;;  %s2207_s4 = inlined_call_operand.hbm [shape: f32[8,32], index: 4, kind: output, shape index: {}]  }
   0x1   :  { %10 = vsyncpa [#allocation6], 0  ;;  %s30_s17 = sshll.u32 %s2204_s1, 4  ;;  %s31_s17 = int_to_ptr.hbm [resolvable:$true] %s30_s17 }
   0x2   :  { %11 = vsyncpa [#allocation4], 0  ;;  %s1981_s18 = smov [#allocation5]   ;;  %s16_s22 = sshll.u32 %s2203_s0, 4  ;;  %s17_s22 = int_to_ptr.hbm [resolvable:$true] %s16_s22 }
   0x3   :  { %s32_s19 = sshll.u32 %s1981_s18, 4  ;;  %s1982_s23 = smov [#allocation2]   ;;  %s33_s19 = int_to_ptr.vmem [resolvable:$true] %s32_s19 }
   0x4   :  { %35 = dma.hbm_to_vmem [thread:$0]  %s31_s17, 64, %s33_s19, [#allocation6]  }
   0x5   :  { %s18_s24 = sshll.u32 %s1982_s23, 4  ;;  %s1983_s25 = smov 128   ;;  %s19_s24 = int_to_ptr.vmem [resolvable:$true] %s18_s24 }
   0x6   :  { %s1984_s26 = smov 8   ;;  %s40_s1 = sshll.u32 %s2205_s2, 4  ;;  %s41_s1 = int_to_ptr.hbm [resolvable:$true] %s40_s1 }
   0x7   :  { %24 = dma.hbm_to_vmem [thread:$0]  %s17_s22, 256, %s19_s24, [#allocation3], %s1983_s25, %s1983_s25, %s1984_s26  }
   0x8   :  { %s1985_s29 = smov [#allocation7]  }
   0x9   :  { %s42_s30 = sshll.u32 %s1985_s29, 4  ;;  %s43_s30 = int_to_ptr.vmem [resolvable:$true] %s42_s30 }
   0xa   :  { %48 = dma.hbm_to_vmem [thread:$0]  %s41_s1, 512, %s43_s30, [#allocation6], %s1983_s25, %s1983_s25, %s1984_s26  }
   0xb   :  { %1975 = dma.done.wait [#allocation3], 256  }
   0xc   :  { %1976 = vsyncadd [#allocation3], 4294967040 }
   0xd   :  { %1977 = dma.done.wait [#allocation6], 576  }
   0xe   :  { %1978 = vsyncadd [#allocation6], 4294966720  ;;  %vm73_vm0 = vcmask 261120   ;;  %v2026_v0 = vld [vmem:[#allocation7 + $0x18] sm:$0xff]  ;;  %v2028_v1 = vld [vmem:[#allocation7 + $0x10] sm:$0xff]  ;;  %s1986_s0 = smov 112  }
   0xf   :  { %v2030_v2 = vld [vmem:[#allocation7 + $0x8] sm:$0xff]  ;;  %v92_v3 = vand.u32 4294901760, %v2026_v0  ;;  %v94_v4 = vand.u32 4294901760, %v2028_v1  ;;  %v2035_v6 = vld [vmem:[#allocation7] sm:$0xff]  ;;  %v69_v8 = vld [vmem:[#allocation2 + $0x8] sm:$0xff]  ;;  %vm298_vm1 = vcmask 130048  }
  0x10   :  { %v96_v5 = vand.u32 4294901760, %v2030_v2  ;;  %v68_v7 = vld [vmem:[#allocation2] sm:$0xff]  ;;  %v98_v9 = vand.u32 4294901760, %v2035_v6  ;;  %v78_v11 = vsel %vm73_vm0, %v69_v8, 0  ;;  %v296_v38 = vld [vmem:[#allocation5] sm:$0xf] }
  0x11   :  { %v75_v10 = vsel %vm73_vm0, %v68_v7, 0  ;;  %93 = vmatpush.msra.mxu0 %v92_v3  ;;  %v130_v12 = vsub.f32 %v2026_v0, %v92_v3  ;;  %v136_v13 = vsub.f32 %v2028_v1, %v94_v4  ;;  %210 = vmatpush.msra.mxu3 %v92_v3  ;;  %v108_v17 = vand.u32 4294901760, %v78_v11  ;;  %v2048_v41 = vld [vmem:[%s2206_s3] ss:$0 sm:$0xff]  ;;  %s1987_s3 = smov 96   ;;  %s1988_s6 = smov 80  }
  0x12   :  { %v142_v14 = vsub.f32 %v2030_v2, %v96_v5  ;;  %v100_v15 = vand.u32 4294901760, %v75_v10  ;;  %v148_v16 = vsub.f32 %v2035_v6, %v98_v9  ;;  %v297_v39 = vmul.f32 0.25, %v296_v38  ;;  %s1989_s7 = smov 64   ;;  %s1990_s8 = smov 16  }
  0x13   :  { %95 = vmatpush.msra.mxu0 %v94_v4  ;;  %176 = vmatpush.msra.mxu2 %v130_v12  ;;  %v131_v18 = vand.u32 4294901760, %v130_v12  ;;  %v137_v20 = vand.u32 4294901760, %v136_v13  ;;  %v109_v23 = vsub.f32 %v78_v11, %v108_v17  ;;  %vm451_vm2 = vcmask 60416   ;;  %s1991_s9 = smov [#allocation8]   ;;  %s1840_s13 = sshll.u32 %s2207_s4, 4  ;;  %s1841_s13 = int_to_ptr.hbm [resolvable:$true] %s1840_s13 }
  0x14   :  { %v101_v19 = vsub.f32 %v75_v10, %v100_v15  ;;  %v143_v21 = vand.u32 4294901760, %v142_v14  ;;  %212 = vmatpush.msra.mxu3 %v94_v4  ;;  %v149_v22 = vand.u32 4294901760, %v148_v16  ;;  %629 = vrot.lane.b32.xlu2 %v297_v39, %s1986_s0  ;;  %v300_v44 = vsel %vm298_vm1, %v297_v39, 0  ;;  %s1838_s10 = sshll.u32 %s1991_s9, 4  ;;  %s1839_s10 = int_to_ptr.vmem [resolvable:$true] %s1838_s10 }
  0x15   :  { %97 = vmatpush.msra.mxu0 %v96_v5  ;;  %179 = vmatpush.msra.mxu2 %v136_v13  ;;  %v132_v24 = vsub.f32 %v130_v12, %v131_v18  ;;  %v138_v26 = vsub.f32 %v136_v13, %v137_v20  ;;  %v110_v32 = vand.u32 4294901760, %v109_v23  ;;  %v2053_v48 = vand.u32 4294901760, %v300_v44 }
  0x16   :  { %v102_v25 = vand.u32 4294901760, %v101_v19  ;;  %v144_v27 = vsub.f32 %v142_v14, %v143_v21  ;;  %214 = vmatpush.msra.mxu3 %v96_v5  ;;  %v150_v28 = vsub.f32 %v148_v16, %v149_v22  ;;  %vm479_vm7 = vcmask 64512  }
  0x17   :  { %99 = vmatpush.msra.mxu0 %v98_v9  ;;  %v133_v29 = vand.u32 4294901760, %v132_v24  ;;  %182 = vmatpush.msra.mxu2 %v142_v14  ;;  %v139_v31 = vand.u32 4294901760, %v138_v26  ;;  %v111_v36 = vsub.f32 %v109_v23, %v110_v32  ;;  %v2058_v53 = vsub.f32 %v300_v44, %v2053_v48 }
  0x18   :  { %v103_v30 = vsub.f32 %v101_v19, %v102_v25  ;;  %216 = vmatpush.msra.mxu3 %v98_v9  ;;  %v145_v34 = vand.u32 4294901760, %v144_v27  ;;  %v151_v35 = vand.u32 4294901760, %v150_v28 }
  0x19   :  { %245 = vmatpush.msrb.mxu0 %v131_v18  ;;  %134 = vmatpush.msra.mxu1 %v133_v29  ;;  %v112_v37 = vand.u32 4294901760, %v111_v36  ;;  %v2061_v57 = vand.u32 4294901760, %v2058_v53 }
  0x1a   :  { %v104_v33 = vand.u32 4294901760, %v103_v30  ;;  %185 = vmatpush.msra.mxu2 %v148_v16  ;;  %220 = vmatmul.f32.vlgmr.msra.gmra.mxu3 %v102_v25 }
  0x1b   :  { %188 = vmatmul.f32.vlgmr.msra.gmra.mxu2 %v101_v19  ;;  %140 = vmatpush.msra.mxu1 %v139_v31  ;;  %v325_v61 = vsub.f32 %v2058_v53, %v2061_v57 }
  0x1c   :  { %105 = vmatmul.f32.vlgmr.msra.gmra.mxu0 %v104_v33 }
  0x1d   :  { %249 = vmatpush.msrb.mxu0 %v137_v20  ;;  %146 = vmatpush.msra.mxu1 %v145_v34 }
  0x1f   :  { %253 = vmatpush.msrb.mxu0 %v143_v21  ;;  %152 = vmatpush.msra.mxu1 %v151_v35 }
  0x20   :  { %154 = vmatmul.f32.vlgmr.msra.gmra.mxu1 %v100_v15 }
  0x21   :  { %257 = vmatpush.msrb.mxu0 %v149_v22  ;;  %280 = vmatpush.msrb.mxu1 %v92_v3  ;;  %v2067_v3 = vand.u32 4294901760, %v325_v61 }
  0x22   :  { %226 = vmatmul.f32.gmra.mxu3 %v110_v32 }
  0x23   :  { %193 = vmatmul.f32.gmra.mxu2 %v109_v23  ;;  %282 = vmatpush.msrb.mxu1 %v94_v4 }
  0x24   :  { %113 = vmatmul.f32.gmra.mxu0 %v112_v37 }
  0x25   :  { %284 = vmatpush.msrb.mxu1 %v96_v5 }
  0x27   :  { %286 = vmatpush.msrb.mxu1 %v98_v9 }
  0x28   :  { %158 = vmatmul.f32.gmra.mxu1 %v108_v17 }
  0x2c   :  { %259 = vmatmul.f32.vlgmr.msrb.gmra.mxu0 %v100_v15 }
  0x30   :  { %288 = vmatmul.f32.vlgmr.msrb.gmra.mxu1 %v100_v15 }
  0x34   :  { %263 = vmatmul.f32.gmra.mxu0 %v108_v17 }
  0x38   :  { %292 = vmatmul.f32.gmra.mxu1 %v108_v17 }
  0x99   :  { %v106_v40 = vpop.f32.mrf.mxu0 }
  0x9a   :  { %v107_v43 = vadd.f32 %v2048_v41, %v106_v40 }
  0x9d   :  { %v155_v42 = vpop.f32.mrf.mxu1  ;;  %v221_v54 = vpop.f32.mrf.mxu3 }
  0x9e   :  { %v156_v46 = vadd.f32 %v155_v42, %v107_v43  ;;  %v189_v49 = vpop.f32.mrf.mxu2 }
  0xa0   :  { %v190_v51 = vadd.f32 %v189_v49, %v156_v46  ;;  %v630_v46 = vpop.permute.xlu2 %629 }
  0xa1   :  { %v114_v45 = vpop.f32.mrf.mxu0 }
  0xa2   :  { %v115_v47 = vadd.f32 %v2048_v41, %v114_v45  ;;  %v222_v56 = vadd.f32 %v221_v54, %v190_v51 }
  0xa5   :  { %v159_v50 = vpop.f32.mrf.mxu1  ;;  %v227_v23 = vpop.f32.mrf.mxu3 }
  0xa6   :  { %v2055_v52 = vadd.f32 %v159_v50, %v115_v47  ;;  %v194_v21 = vpop.f32.mrf.mxu2  ;;  %v633_v50 = vsel %vm298_vm1, %v630_v46, 0 }
  0xa8   :  { %v195_v51 = vadd.f32 %v194_v21, %v2055_v52 }
  0xa9   :  { %v260_v55 = vpop.f32.mrf.mxu0 }
  0xaa   :  { %v261_v58 = vadd.f32 %v260_v55, %v222_v56 }
  0xad   :  { %v289_v59 = vpop.f32.mrf.mxu1 }
  0xae   :  { %v290_v60 = vadd.f32 %v289_v59, %v261_v58  ;;  %v2092_v59 = vand.u32 4294901760, %v633_v50 }
  0xb0   :  { %476 = vrot.lane.b32.xlu1 %v290_v60, %s1987_s3  ;;  %v303_v62 = vsel %vm298_vm1, %v290_v60, 0 }
  0xb1   :  { %v320_v63 = vand.u32 4294901760, %v303_v62  ;;  %v264_v25 = vpop.f32.mrf.mxu0 }
  0xb3   :  { %321 = vmatpush.xpose.msrb.mxu2 %v320_v63  ;;  %445 = vmatpush.xpose.msra.mxu1 %v320_v63  ;;  %v347_v4 = vsub.f32 %v303_v62, %v320_v63  ;;  %v228_v62 = vadd.f32 %v227_v23, %v195_v51 }
  0xb5   :  { %v348_v5 = vand.u32 4294901760, %v347_v4  ;;  %v293_v27 = vpop.f32.mrf.mxu1 }
  0xb6   :  { %327 = vmatmul.f32.vlgmr.msrb.gmra.mxu2 %v2067_v3  ;;  %447 = vmatmul.f32.vlgmr.msra.gmra.mxu1 %v2053_v48 }
  0xb7   :  { %374 = vmatpush.xpose.msra.mxu2 %v347_v4  ;;  %423 = vmatpush.xpose.msra.mxu0 %v348_v5  ;;  %v349_v7 = vsub.f32 %v347_v4, %v348_v5  ;;  %v265_v5 = vadd.f32 %v264_v25, %v228_v62 }
  0xb8   :  { %631 = vrot.lane.b32.xlu1 %v290_v60, %s1986_s0 }
  0xb9   :  { %v350_v8 = vand.u32 4294901760, %v349_v7 }
  0xba   :  { %425 = vmatmul.f32.vlgmr.msra.gmra.mxu0 %v2053_v48 }
  0xbb   :  { %351 = vmatpush.xpose.msrb.mxu3 %v350_v8  ;;  %v2095_v8 = vsub.f32 %v633_v50, %v2092_v59 }
  0xbe   :  { %353 = vmatmul.f32.vlgmr.msrb.gmra.mxu3 %v2053_v48  ;;  %377 = vmatmul.f32.vlgmr.msra.gmra.mxu2 %v2058_v53 }
  0xbf   :  { %397 = vmatpush.xpose.msra.mxu3 %v320_v63 }
  0xc0   :  { %807 = vrot.lane.b32.xlu1 %v290_v60, %s1988_s6 }
  0xc6   :  { %401 = vmatmul.f32.vlgmr.msra.gmra.mxu3 %v2061_v57 }
 0x122   :  { %v477_v9 = vpop.permute.xlu1 %476 }
 0x123   :  { %v498_v10 = vand.u32 4294901760, %v477_v9 }
 0x125   :  { %v525_v11 = vsub.f32 %v477_v9, %v498_v10  ;;  %499 = vmatpush.msrb.mxu2 %v498_v10  ;;  %575 = vmatpush.msrb.mxu1 %v498_v10 }
 0x127   :  { %v526_v12 = vand.u32 4294901760, %v525_v11  ;;  %552 = vmatpush.msrb.mxu0 %v525_v11 }
 0x129   :  { %v527_v13 = vsub.f32 %v525_v11, %v526_v12  ;;  %601 = vmatpush.msra.mxu2 %v526_v12  ;;  %v2101_v12 = vand.u32 4294901760, %v2095_v8 }
 0x12a   :  { %v632_v14 = vpop.permute.xlu1 %631 }
 0x12b   :  { %v528_v15 = vand.u32 4294901760, %v527_v13  ;;  %v635_v16 = vsel %vm298_vm1, %v632_v14, 0  ;;  %v657_v21 = vsub.f32 %v2095_v8, %v2101_v12 }
 0x12c   :  { %v2078_v17 = vand.u32 4294901760, %v635_v16 }
 0x12d   :  { %529 = vmatpush.msrb.mxu3 %v528_v15 }
 0x12e   :  { %v2081_v18 = vsub.f32 %v635_v16, %v2078_v17  ;;  %653 = vmatpush.xpose.msra.mxu0 %v2078_v17 }
 0x12f   :  { %623 = vmatpush.msra.mxu3 %v498_v10  ;;  %v2097_v10 = vadd.f32 %v293_v27, %v265_v5 }
 0x130   :  { %v680_v19 = vand.u32 4294901760, %v2081_v18 }
 0x131   :  { %v965_v16 = vsel %vm298_vm1, %v2097_v10, 0 }
 0x132   :  { %v681_v20 = vsub.f32 %v2081_v18, %v680_v19  ;;  %v808_v54 = vpop.permute.xlu1 %807  ;;  %v2110_v23 = vand.u32 4294901760, %v965_v16 }
 0x133   :  { %v448_v34 = vpop.f32.mrf.mxu1  ;;  %v828_v60 = vand.u32 4294901760, %v808_v54 }
 0x134   :  { %v682_v22 = vand.u32 4294901760, %v681_v20 }
 0x135   :  { %v855_v52 = vsub.f32 %v808_v54, %v828_v60 }
 0x136   :  { %683 = vmatpush.xpose.msra.mxu1 %v682_v22 }
 0x137   :  { %v426_v32 = vpop.f32.mrf.mxu0  ;;  %v856_v14 = vand.u32 4294901760, %v855_v52 }
 0x139   :  { %v328_v24 = vpop.f32.mrf.mxu2  ;;  %v857_v22 = vsub.f32 %v855_v52, %v856_v14 }
 0x13b   :  { %v858_v27 = vand.u32 4294901760, %v857_v22 }
 0x141   :  { %v354_v26 = vpop.f32.mrf.mxu3  ;;  %v378_v29 = vpop.f32.mrf.mxu2 }
 0x142   :  { %v355_v28 = vadd.f32 %v354_v26, %v328_v24  ;;  %v2113_v26 = vand.u32 4294901760, %v657_v21 }
 0x144   :  { %v379_v30 = vadd.f32 %v378_v29, %v355_v28  ;;  %v2116_v28 = vsub.f32 %v965_v16, %v2110_v23 }
 0x149   :  { %v402_v31 = vpop.f32.mrf.mxu3 }
 0x14a   :  { %v403_v33 = vadd.f32 %v402_v31, %v379_v30 }
 0x14c   :  { %v427_v35 = vadd.f32 %v426_v32, %v403_v33 }
 0x14e   :  { %v449_v36 = vadd.f32 %v448_v34, %v427_v35 }
 0x150   :  { %v452_v37 = vsel %vm451_vm2, %v449_v36, -inf }
 0x151   :  { %453 = vmax.xlane.f32.xlu0 %v452_v37 }
 0x1c4   :  { %v454_v38 = vpop.xlane.xlu0 %453 }
 0x1c5   :  { %v455_v39 = vsub.f32 %v449_v36, %v454_v38 }
 0x1c7   :  { %v456_v40 = vmul.f32 1.442695, %v455_v39 }
 0x1c9   :  { %1863 = vpow2.f32 %v456_v40 }
 0x1cf   :  { %v1864_v42 = vpop.eup %1863 }
 0x1d0   :  { %v458_v43 = vsel %vm451_vm2, %v1864_v42, 0.0 }
 0x1d1   :  { %459 = vadd.xlane.f32.xlu0 %v458_v43 }
 0x244   :  { %v460_v44 = vpop.xlane.xlu0 %459 }
 0x245   :  { %1865 = vrcp.f32 %v460_v44  ;;  %v472_v55 = vand.u32 2147483648, %v460_v44  ;;  %v470_v58 = vand.u32 2147483647, %v460_v44  ;;  %vm466_vm4 = vweird.f32 %v460_v44 }
 0x247   :  { %v473_v63 = vor.u32 1.1754944e-38, %v472_v55  ;;  %vm471_vm6 = vcmp.eq.f32.partialorder %v470_v58, 8.507059e+37 }
 0x24b   :  { %v1866_v45 = vpop.eup %1865 }
 0x24c   :  { %v462_v47 = vmul.f32 %v1866_v45, %v460_v44  ;;  %vm467_vm3 = vweird.f32 %v1866_v45 }
 0x24d   :  { %vm468_vm5 = vmor %vm466_vm4, %vm467_vm3 }
 0x24e   :  { %v463_v49 = vsub.f32 1.0, %v462_v47 }
 0x250   :  { %v464_v56 = vmul.f32 %v1866_v45, %v463_v49 }
 0x252   :  { %v465_v61 = vadd.f32 %v1866_v45, %v464_v56 }
 0x254   :  { %v469_v4 = vsel %vm468_vm5, %v1866_v45, %v465_v61 }
 0x255   :  { %v474_v7 = vsel %vm471_vm6, %v473_v63, %v469_v4 }
 0x256   :  { %v475_v9 = vmul.f32 %v1864_v42, %v474_v7 }
 0x258   :  { %v481_v11 = vsel %vm479_vm7, %v475_v9, 0 }
 0x259   :  { %v500_v13 = vand.u32 4294901760, %v481_v11 }
 0x25b   :  { %531 = vmatmul.f32.vlgmr.msrb.gmra.mxu3 %v500_v13  ;;  %v501_v15 = vsub.f32 %v481_v11, %v500_v13 }
 0x25c   :  { %729 = vmatpush.xpose.msrb.mxu3 %v2078_v17 }
 0x25d   :  { %555 = vmatmul.f32.vlgmr.msrb.gmra.mxu0 %v501_v15  ;;  %v502_v20 = vand.u32 4294901760, %v501_v15 }
 0x25e   :  { %755 = vmatpush.xpose.msrb.mxu0 %v680_v19  ;;  %v1010_v19 = vand.u32 4294901760, %v2116_v28 }
 0x25f   :  { %579 = vmatmul.f32.vlgmr.msrb.gmra.mxu1 %v502_v20  ;;  %v503_v24 = vsub.f32 %v501_v15, %v502_v20 }
 0x260   :  { %777 = vmatpush.xpose.msrb.mxu1 %v2078_v17  ;;  %v1011_v17 = vsub.f32 %v2116_v28, %v1010_v19 }
 0x261   :  { %v504_v25 = vand.u32 4294901760, %v503_v24 }
 0x263   :  { %505 = vmatmul.f32.vlgmr.msrb.gmra.mxu2 %v504_v25  ;;  %625 = vmatmul.f32.vlgmr.msra.gmra.mxu3 %v500_v13 }
 0x264   :  { %706 = vmatpush.xpose.msrb.mxu2 %v2081_v18  ;;  %859 = vmatpush.msra.mxu3 %v858_v27  ;;  %v1012_v18 = vand.u32 4294901760, %v1011_v17 }
 0x265   :  { %659 = vmatmul.f32.vlgmr.msra.gmra.mxu0 %v2113_v26 }
 0x266   :  { %882 = vmatpush.msra.mxu0 %v855_v52 }
 0x267   :  { %685 = vmatmul.f32.vlgmr.msra.gmra.mxu1 %v2092_v59 }
 0x268   :  { %905 = vmatpush.msra.mxu1 %v828_v60 }
 0x26b   :  { %603 = vmatmul.f32.vlgmr.msra.gmra.mxu2 %v500_v13  ;;  %733 = vmatmul.f32.vlgmr.msrb.gmra.mxu3 %v2101_v12 }
 0x26c   :  { %829 = vmatpush.msra.mxu2 %v828_v60  ;;  %953 = vmatpush.msrb.mxu3 %v828_v60 }
 0x26d   :  { %757 = vmatmul.f32.vlgmr.msrb.gmra.mxu0 %v2092_v59 }
 0x26e   :  { %983 = vmatpush.xpose.msrb.mxu0 %v2110_v23 }
 0x26f   :  { %779 = vmatmul.f32.vlgmr.msrb.gmra.mxu1 %v2092_v59 }
 0x270   :  { %1013 = vmatpush.xpose.msrb.mxu1 %v1012_v18 }
 0x273   :  { %709 = vmatmul.f32.vlgmr.msrb.gmra.mxu2 %v2095_v8 }
 0x274   :  { %931 = vmatpush.msrb.mxu2 %v856_v14 }
 0x2da   :  { %v556_v29 = vpop.f32.mrf.mxu0 }
 0x2dc   :  { %v580_v33 = vpop.f32.mrf.mxu1 }
 0x2de   :  { %v532_v30 = vpop.f32.mrf.mxu3 }
 0x2e2   :  { %v660_v39 = vpop.f32.mrf.mxu0 }
 0x2e4   :  { %v686_v42 = vpop.f32.mrf.mxu1 }
 0x2e5   :  { %v687_v43 = vadd.f32 %v686_v42, %v660_v39 }
 0x2e6   :  { %v506_v31 = vpop.f32.mrf.mxu2  ;;  %v626_v38 = vpop.f32.mrf.mxu3 }
 0x2e7   :  { %v533_v32 = vadd.f32 %v532_v30, %v506_v31 }
 0x2e9   :  { %v557_v34 = vadd.f32 %v556_v29, %v533_v32 }
 0x2ea   :  { %v758_v49 = vpop.f32.mrf.mxu0 }
 0x2eb   :  { %v581_v35 = vadd.f32 %v580_v33, %v557_v34 }
 0x2ec   :  { %v780_v51 = vpop.f32.mrf.mxu1 }
 0x2ee   :  { %v604_v36 = vpop.f32.mrf.mxu2  ;;  %v734_v46 = vpop.f32.mrf.mxu3 }
 0x2ef   :  { %v605_v37 = vadd.f32 %v604_v36, %v581_v35 }
 0x2f1   :  { %v2130_v40 = vadd.f32 %v626_v38, %v605_v37 }
 0x2f6   :  { %v710_v44 = vpop.f32.mrf.mxu2 }
 0x2f7   :  { %v711_v45 = vadd.f32 %v710_v44, %v687_v43 }
 0x2f9   :  { %v735_v47 = vadd.f32 %v734_v46, %v711_v45 }
 0x2fb   :  { %v759_v50 = vadd.f32 %v758_v49, %v735_v47 }
 0x2fd   :  { %v781_v54 = vadd.f32 %v780_v51, %v759_v50 }
 0x2ff   :  { %v783_v55 = vsel %vm451_vm2, %v781_v54, -inf }
 0x300   :  { %784 = vmax.xlane.f32.xlu2 %v783_v55 }
 0x318   :  { %1289 = vrot.lane.b32.xlu2 %v2097_v10, %s1986_s0 }
 0x320   :  { %1463 = vrot.lane.b32.xlu2 %v2097_v10, %s1988_s6 }
 0x328   :  { %1635 = vrot.lane.b32.xlu2 %v2026_v0, %s1989_s7 }
 0x373   :  { %v785_v56 = vpop.xlane.xlu2 %784 }
 0x374   :  { %v786_v58 = vsub.f32 %v781_v54, %v785_v56 }
 0x376   :  { %v787_v60 = vmul.f32 1.442695, %v786_v58 }
 0x378   :  { %1867 = vpow2.f32 %v787_v60 }
 0x37b   :  { %v1290_v45 = vpop.permute.xlu2 %1289 }
 0x37c   :  { %v1291_v49 = vsel %vm298_vm1, %v1290_v45, 0 }
 0x37d   :  { %v1308_v51 = vand.u32 4294901760, %v1291_v49 }
 0x37e   :  { %v1868_v61 = vpop.eup %1867 }
 0x37f   :  { %v789_v62 = vsel %vm451_vm2, %v1868_v61, 0.0  ;;  %v1335_v54 = vsub.f32 %v1291_v49, %v1308_v51 }
 0x380   :  { %790 = vadd.xlane.f32.xlu0 %v789_v62 }
 0x381   :  { %v1336_v56 = vand.u32 4294901760, %v1335_v54 }
 0x383   :  { %v1337_v58 = vsub.f32 %v1335_v54, %v1336_v56 }
 0x3f3   :  { %v791_v63 = vpop.xlane.xlu0 %790 }
 0x3f4   :  { %1869 = vrcp.f32 %v791_v63  ;;  %v803_v52 = vand.u32 2147483648, %v791_v63  ;;  %v801_v11 = vand.u32 2147483647, %v791_v63  ;;  %vm797_vm9 = vweird.f32 %v791_v63 }
 0x3f6   :  { %v804_v14 = vor.u32 1.1754944e-38, %v803_v52  ;;  %vm802_vm11 = vcmp.eq.f32.partialorder %v801_v11, 8.507059e+37  ;;  %v1464_v11 = vpop.permute.xlu2 %1463 }
 0x3fa   :  { %v1870_v4 = vpop.eup %1869 }
 0x3fb   :  { %v793_v5 = vmul.f32 %v1870_v4, %v791_v63  ;;  %vm798_vm8 = vweird.f32 %v1870_v4 }
 0x3fc   :  { %vm799_vm10 = vmor %vm797_vm9, %vm798_vm8 }
 0x3fd   :  { %v794_v7 = vsub.f32 1.0, %v793_v5 }
 0x3ff   :  { %v795_v9 = vmul.f32 %v1870_v4, %v794_v7 }
 0x401   :  { %v796_v13 = vadd.f32 %v1870_v4, %v795_v9 }
 0x403   :  { %v800_v15 = vsel %vm799_vm10, %v1870_v4, %v796_v13 }
 0x404   :  { %v805_v16 = vsel %vm802_vm11, %v804_v14, %v800_v15 }
 0x405   :  { %v806_v20 = vmul.f32 %v1868_v61, %v805_v16  ;;  %v1338_v61 = vand.u32 4294901760, %v1337_v58  ;;  %v1484_v16 = vand.u32 4294901760, %v1464_v11 }
 0x407   :  { %v811_v21 = vsel %vm479_vm7, %v806_v20, 0 }
 0x408   :  { %v830_v22 = vand.u32 4294901760, %v811_v21 }
 0x40a   :  { %861 = vmatmul.f32.vlgmr.msra.gmra.mxu3 %v830_v22  ;;  %v831_v24 = vsub.f32 %v811_v21, %v830_v22 }
 0x40b   :  { %1059 = vmatpush.xpose.msra.mxu3 %v2110_v23 }
 0x40c   :  { %885 = vmatmul.f32.vlgmr.msra.gmra.mxu0 %v831_v24  ;;  %v832_v25 = vand.u32 4294901760, %v831_v24 }
 0x40d   :  { %1085 = vmatpush.xpose.msra.mxu0 %v1010_v19 }
 0x40e   :  { %909 = vmatmul.f32.vlgmr.msra.gmra.mxu1 %v832_v25  ;;  %v833_v27 = vsub.f32 %v831_v24, %v832_v25  ;;  %v1511_v25 = vsub.f32 %v1464_v11, %v1484_v16 }
 0x40f   :  { %1107 = vmatpush.xpose.msra.mxu1 %v2110_v23 }
 0x410   :  { %v834_v17 = vand.u32 4294901760, %v833_v27 }
 0x412   :  { %835 = vmatmul.f32.vlgmr.msra.gmra.mxu2 %v834_v17  ;;  %955 = vmatmul.f32.vlgmr.msrb.gmra.mxu3 %v830_v22 }
 0x413   :  { %1036 = vmatpush.xpose.msra.mxu2 %v2116_v28 }
 0x414   :  { %989 = vmatmul.f32.vlgmr.msrb.gmra.mxu0 %v2067_v3 }
 0x416   :  { %1015 = vmatmul.f32.vlgmr.msrb.gmra.mxu1 %v2053_v48 }
 0x41a   :  { %933 = vmatmul.f32.vlgmr.msrb.gmra.mxu2 %v830_v22  ;;  %1063 = vmatmul.f32.vlgmr.msra.gmra.mxu3 %v2061_v57 }
 0x41c   :  { %1087 = vmatmul.f32.vlgmr.msra.gmra.mxu0 %v2053_v48 }
 0x41e   :  { %1109 = vmatmul.f32.vlgmr.msra.gmra.mxu1 %v2053_v48 }
 0x422   :  { %1039 = vmatmul.f32.vlgmr.msra.gmra.mxu2 %v2058_v53 }
 0x489   :  { %v886_v19 = vpop.f32.mrf.mxu0 }
 0x48b   :  { %v910_v29 = vpop.f32.mrf.mxu1 }
 0x48d   :  { %v862_v23 = vpop.f32.mrf.mxu3 }
 0x491   :  { %v990_v31 = vpop.f32.mrf.mxu0 }
 0x493   :  { %v1016_v35 = vpop.f32.mrf.mxu1 }
 0x494   :  { %v1017_v57 = vadd.f32 %v1016_v35, %v990_v31 }
 0x495   :  { %v836_v28 = vpop.f32.mrf.mxu2  ;;  %v956_v32 = vpop.f32.mrf.mxu3 }
 0x496   :  { %v863_v18 = vadd.f32 %v862_v23, %v836_v28  ;;  %v1636_v28 = vpop.permute.xlu2 %1635 }
 0x498   :  { %v887_v3 = vadd.f32 %v886_v19, %v863_v18  ;;  %v1512_v19 = vand.u32 4294901760, %v1511_v25 }
 0x499   :  { %v1088_v37 = vpop.f32.mrf.mxu0 }
 0x49a   :  { %v911_v30 = vadd.f32 %v910_v29, %v887_v3  ;;  %v2163_v3 = vand.u32 4294901760, %v1636_v28 }
 0x49b   :  { %v1110_v39 = vpop.f32.mrf.mxu1 }
 0x49d   :  { %v934_v33 = vpop.f32.mrf.mxu2  ;;  %v1064_v36 = vpop.f32.mrf.mxu3 }
 0x49e   :  { %v935_v0 = vadd.f32 %v934_v33, %v911_v30  ;;  %v1513_v30 = vsub.f32 %v1511_v25, %v1512_v19 }
 0x4a0   :  { %v957_v34 = vadd.f32 %v956_v32, %v935_v0  ;;  %v2166_v32 = vsub.f32 %v1636_v28, %v2163_v3  ;;  %v1514_v0 = vand.u32 4294901760, %v1513_v30 }
 0x4a2   :  { %960 = vrot.lane.b32.xlu2 %v957_v34, %s1990_s8  ;;  %v1690_v34 = vand.u32 4294901760, %v2166_v32 }
 0x4a4   :  { %v1691_v35 = vsub.f32 %v2166_v32, %v1690_v34 }
 0x4a5   :  { %v1040_v48 = vpop.f32.mrf.mxu2 }
 0x4a6   :  { %v1041_v53 = vadd.f32 %v1040_v48, %v1017_v57  ;;  %v1692_v57 = vand.u32 4294901760, %v1691_v35 }
 0x4a8   :  { %v1065_v38 = vadd.f32 %v1064_v36, %v1041_v53 }
 0x4aa   :  { %v1089_v42 = vadd.f32 %v1088_v37, %v1065_v38  ;;  %1631 = vrot.lane.b32.xlu2 %v2030_v2, %s1989_s7 }
 0x4ac   :  { %v1111_v43 = vadd.f32 %v1110_v39, %v1089_v42 }
 0x4ae   :  { %v1113_v44 = vsel %vm451_vm2, %v1111_v43, -inf }
 0x4af   :  { %1114 = vmax.xlane.f32.xlu0 %v1113_v44 }
 0x4b2   :  { %1641 = vrot.lane.b32.xlu2 %v2048_v41, %s1989_s7 }
 0x4c3   :  { %1137 = vrot.lane.b32.xlu0 %v2097_v10, %s1987_s3 }
 0x4fc   :  { %v961_v35 = vpop.permute.xlu2 %960 }
 0x522   :  { %v1115_v46 = vpop.xlane.xlu0 %1114 }
 0x523   :  { %v1116_v47 = vsub.f32 %v1111_v43, %v1115_v46 }
 0x525   :  { %v1117_v50 = vmul.f32 1.442695, %v1116_v47 }
 0x527   :  { %1871 = vpow2.f32 %v1117_v50 }
 0x52d   :  { %v1872_v2 = vpop.eup %1871 }
 0x52e   :  { %v1119_v55 = vsel %vm451_vm2, %v1872_v2, 0.0 }
 0x52f   :  { %1120 = vadd.xlane.f32.xlu1 %v1119_v55 }
 0x535   :  { %v1138_v60 = vpop.permute.xlu0 %1137 }
 0x536   :  { %v1158_v41 = vand.u32 4294901760, %v1138_v60 }
 0x538   :  { %v1185_v62 = vsub.f32 %v1138_v60, %v1158_v41  ;;  %1159 = vmatpush.msrb.mxu2 %v1158_v41  ;;  %1235 = vmatpush.msrb.mxu1 %v1158_v41 }
 0x53a   :  { %1339 = vmatpush.xpose.msra.mxu1 %v1338_v61  ;;  %v1186_v10 = vand.u32 4294901760, %v1185_v62  ;;  %1212 = vmatpush.msrb.mxu0 %v1185_v62 }
 0x53c   :  { %1309 = vmatpush.xpose.msra.mxu0 %v1308_v51  ;;  %v1187_v63 = vsub.f32 %v1185_v62, %v1186_v10  ;;  %1261 = vmatpush.msra.mxu2 %v1186_v10 }
 0x53e   :  { %v1188_v4 = vand.u32 4294901760, %v1187_v63 }
 0x540   :  { %1189 = vmatpush.msrb.mxu3 %v1188_v4 }
 0x542   :  { %1283 = vmatpush.msra.mxu3 %v1158_v41 }
 0x5a2   :  { %v1121_v5 = vpop.xlane.xlu1 %1120 }
 0x5a3   :  { %1873 = vrcp.f32 %v1121_v5  ;;  %v1133_v13 = vand.u32 2147483648, %v1121_v5  ;;  %v1131_v15 = vand.u32 2147483647, %v1121_v5  ;;  %vm1127_vm13 = vweird.f32 %v1121_v5 }
 0x5a5   :  { %v1134_v21 = vor.u32 1.1754944e-38, %v1133_v13  ;;  %vm1132_vm15 = vcmp.eq.f32.partialorder %v1131_v15, 8.507059e+37 }
 0x5a9   :  { %v1874_v7 = vpop.eup %1873 }
 0x5aa   :  { %v1123_v52 = vmul.f32 %v1874_v7, %v1121_v5  ;;  %vm1128_vm12 = vweird.f32 %v1874_v7 }
 0x5ab   :  { %vm1129_vm14 = vmor %vm1127_vm13, %vm1128_vm12 }
 0x5ac   :  { %v1124_v9 = vsub.f32 1.0, %v1123_v52 }
 0x5ae   :  { %v1125_v14 = vmul.f32 %v1874_v7, %v1124_v9 }
 0x5b0   :  { %v1126_v20 = vadd.f32 %v1874_v7, %v1125_v14 }
 0x5b2   :  { %v1130_v22 = vsel %vm1129_vm14, %v1874_v7, %v1126_v20 }
 0x5b3   :  { %v1135_v24 = vsel %vm1132_vm15, %v1134_v21, %v1130_v22 }
 0x5b4   :  { %v1136_v27 = vmul.f32 %v1872_v2, %v1135_v24 }
 0x5b6   :  { %v1141_v17 = vsel %vm479_vm7, %v1136_v27, 0 }
 0x5b7   :  { %v1160_v23 = vand.u32 4294901760, %v1141_v17 }
 0x5b9   :  { %1191 = vmatmul.f32.vlgmr.msrb.gmra.mxu3 %v1160_v23  ;;  %v1161_v18 = vsub.f32 %v1141_v17, %v1160_v23 }
 0x5ba   :  { %1385 = vmatpush.xpose.msrb.mxu3 %v1308_v51 }
 0x5bb   :  { %1215 = vmatmul.f32.vlgmr.msrb.gmra.mxu0 %v1161_v18  ;;  %v1162_v29 = vand.u32 4294901760, %v1161_v18 }
 0x5bc   :  { %1411 = vmatpush.xpose.msrb.mxu0 %v1336_v56 }
 0x5bd   :  { %1239 = vmatmul.f32.vlgmr.msrb.gmra.mxu1 %v1162_v29  ;;  %v1163_v31 = vsub.f32 %v1161_v18, %v1162_v29 }
 0x5be   :  { %1433 = vmatpush.xpose.msrb.mxu1 %v1308_v51 }
 0x5bf   :  { %v1164_v33 = vand.u32 4294901760, %v1163_v31 }
 0x5c1   :  { %1165 = vmatmul.f32.vlgmr.msrb.gmra.mxu2 %v1164_v33  ;;  %1285 = vmatmul.f32.vlgmr.msra.gmra.mxu3 %v1160_v23 }
 0x5c2   :  { %1362 = vmatpush.xpose.msrb.mxu2 %v1335_v54  ;;  %1515 = vmatpush.msra.mxu3 %v1514_v0 }
 0x5c3   :  { %1315 = vmatmul.f32.vlgmr.msra.gmra.mxu0 %v2113_v26 }
 0x5c4   :  { %1538 = vmatpush.msra.mxu0 %v1511_v25 }
 0x5c5   :  { %1341 = vmatmul.f32.vlgmr.msra.gmra.mxu1 %v2092_v59 }
 0x5c6   :  { %1561 = vmatpush.msra.mxu1 %v1484_v16 }
 0x5c9   :  { %1263 = vmatmul.f32.vlgmr.msra.gmra.mxu2 %v1160_v23  ;;  %1389 = vmatmul.f32.vlgmr.msrb.gmra.mxu3 %v2101_v12 }
 0x5ca   :  { %1485 = vmatpush.msra.mxu2 %v1484_v16  ;;  %1609 = vmatpush.msrb.mxu3 %v1484_v16 }
 0x5cb   :  { %1413 = vmatmul.f32.vlgmr.msrb.gmra.mxu0 %v2092_v59 }
 0x5cc   :  { %1660 = vmatpush.msrb.mxu0 %v2163_v3 }
 0x5cd   :  { %1435 = vmatmul.f32.vlgmr.msrb.gmra.mxu1 %v2092_v59 }
 0x5ce   :  { %1693 = vmatpush.msrb.mxu1 %v1692_v57 }
 0x5d1   :  { %1365 = vmatmul.f32.vlgmr.msrb.gmra.mxu2 %v2095_v8 }
 0x5d2   :  { %1587 = vmatpush.msrb.mxu2 %v1512_v19 }
 0x638   :  { %v1216_v48 = vpop.f32.mrf.mxu0 }
 0x63a   :  { %v1240_v37 = vpop.f32.mrf.mxu1 }
 0x63c   :  { %v1192_v26 = vpop.f32.mrf.mxu3 }
 0x640   :  { %v1316_v44 = vpop.f32.mrf.mxu0 }
 0x642   :  { %v1342_v46 = vpop.f32.mrf.mxu1 }
 0x643   :  { %v1343_v47 = vadd.f32 %v1342_v46, %v1316_v44 }
 0x644   :  { %v1166_v36 = vpop.f32.mrf.mxu2  ;;  %v1286_v39 = vpop.f32.mrf.mxu3 }
 0x645   :  { %v1193_v53 = vadd.f32 %v1192_v26, %v1166_v36 }
 0x647   :  { %v1217_v38 = vadd.f32 %v1216_v48, %v1193_v53  ;;  %v1632_v48 = vpop.permute.xlu2 %1631 }
 0x648   :  { %v1414_v51 = vpop.f32.mrf.mxu0  ;;  %v1663_v53 = vand.u32 4294901760, %v1632_v48 }
 0x649   :  { %v1241_v12 = vadd.f32 %v1240_v37, %v1217_v38 }
 0x64a   :  { %v1436_v2 = vpop.f32.mrf.mxu1  ;;  %v1701_v38 = vsub.f32 %v1632_v48, %v1663_v53 }
 0x64c   :  { %v1264_v42 = vpop.f32.mrf.mxu2  ;;  %v1390_v50 = vpop.f32.mrf.mxu3 }
 0x64d   :  { %v1265_v43 = vadd.f32 %v1264_v42, %v1241_v12  ;;  %v1702_v12 = vand.u32 4294901760, %v1701_v38 }
 0x64f   :  { %v2179_v45 = vadd.f32 %v1286_v39, %v1265_v43  ;;  %v1703_v43 = vsub.f32 %v1701_v38, %v1702_v12 }
 0x654   :  { %v1366_v59 = vpop.f32.mrf.mxu2 }
 0x655   :  { %v1367_v49 = vadd.f32 %v1366_v59, %v1343_v47  ;;  %v963_v59 = vsel %vm298_vm1, %v2130_v40, %v961_v35 }
 0x657   :  { %v1391_v8 = vadd.f32 %v1390_v50, %v1367_v49 }
 0x659   :  { %v1415_v54 = vadd.f32 %v1414_v51, %v1391_v8 }
 0x65b   :  { %v1437_v55 = vadd.f32 %v1436_v2, %v1415_v54 }
 0x65d   :  { %v1439_v56 = vsel %vm451_vm2, %v1437_v55, -inf }
 0x65e   :  { %1440 = vmax.xlane.f32.xlu0 %v1439_v56 }
 0x672   :  { %1633 = vrot.lane.b32.xlu0 %v2028_v1, %s1989_s7 }
 0x6d1   :  { %v1441_v58 = vpop.xlane.xlu0 %1440 }
 0x6d2   :  { %v1442_v60 = vsub.f32 %v1437_v55, %v1441_v58 }
 0x6d4   :  { %v1443_v41 = vmul.f32 1.442695, %v1442_v60 }
 0x6d6   :  { %1875 = vpow2.f32 %v1443_v41 }
 0x6dc   :  { %v1876_v61 = vpop.eup %1875 }
 0x6dd   :  { %v1445_v62 = vsel %vm451_vm2, %v1876_v61, 0.0  ;;  %vm1623_vm2 = vcmask 1043456  }
 0x6de   :  { %1446 = vadd.xlane.f32.xlu1 %v1445_v62 }
 0x6e4   :  { %v1634_v57 = vpop.permute.xlu0 %1633 }
 0x6e5   :  { %v1661_v26 = vand.u32 4294901760, %v1634_v57 }
 0x6e7   :  { %v1695_v36 = vsub.f32 %v1634_v57, %v1661_v26  ;;  %1662 = vmatpush.msrb.mxu0 %v1661_v26 }
 0x6e9   :  { %v1696_v37 = vand.u32 4294901760, %v1695_v36  ;;  %1664 = vmatpush.msrb.mxu0 %v1663_v53 }
 0x6eb   :  { %v1697_v39 = vsub.f32 %v1695_v36, %v1696_v37 }
 0x6ed   :  { %v1698_v42 = vand.u32 4294901760, %v1697_v39 }
 0x6ef   :  { %1699 = vmatpush.msrb.mxu1 %v1698_v42 }
 0x751   :  { %v1447_v10 = vpop.xlane.xlu1 %1446 }
 0x752   :  { %1877 = vrcp.f32 %v1447_v10  ;;  %v1459_v7 = vand.u32 2147483648, %v1447_v10  ;;  %v1457_v9 = vand.u32 2147483647, %v1447_v10  ;;  %vm1453_vm4 = vweird.f32 %v1447_v10 }
 0x754   :  { %v1460_v1 = vor.u32 1.1754944e-38, %v1459_v7  ;;  %vm1458_vm6 = vcmp.eq.f32.partialorder %v1457_v9, 8.507059e+37 }
 0x758   :  { %v1878_v63 = vpop.eup %1877 }
 0x759   :  { %v1449_v4 = vmul.f32 %v1878_v63, %v1447_v10  ;;  %vm1454_vm3 = vweird.f32 %v1878_v63 }
 0x75a   :  { %vm1455_vm5 = vmor %vm1453_vm4, %vm1454_vm3 }
 0x75b   :  { %v1450_v5 = vsub.f32 1.0, %v1449_v4 }
 0x75d   :  { %v1451_v52 = vmul.f32 %v1878_v63, %v1450_v5 }
 0x75f   :  { %v1452_v11 = vadd.f32 %v1878_v63, %v1451_v52 }
 0x761   :  { %v1456_v13 = vsel %vm1455_vm5, %v1878_v63, %v1452_v11 }
 0x762   :  { %v1461_v14 = vsel %vm1458_vm6, %v1460_v1, %v1456_v13 }
 0x763   :  { %v1462_v15 = vmul.f32 %v1876_v61, %v1461_v14 }
 0x765   :  { %v1467_v16 = vsel %vm479_vm7, %v1462_v15, 0 }
 0x766   :  { %v1486_v20 = vand.u32 4294901760, %v1467_v16 }
 0x768   :  { %1517 = vmatmul.f32.vlgmr.msra.gmra.mxu3 %v1486_v20  ;;  %v1487_v21 = vsub.f32 %v1467_v16, %v1486_v20 }
 0x769   :  { %1760 = vmatpush.msra.mxu3 %v2163_v3 }
 0x76a   :  { %1541 = vmatmul.f32.vlgmr.msra.gmra.mxu0 %v1487_v21  ;;  %v1488_v22 = vand.u32 4294901760, %v1487_v21 }
 0x76b   :  { %1762 = vmatpush.msra.mxu3 %v1661_v26 }
 0x76c   :  { %1565 = vmatmul.f32.vlgmr.msra.gmra.mxu1 %v1488_v22  ;;  %v1489_v24 = vsub.f32 %v1487_v21, %v1488_v22 }
 0x76d   :  { %1764 = vmatpush.msra.mxu3 %v1663_v53 }
 0x76e   :  { %v1490_v25 = vand.u32 4294901760, %v1489_v24 }
 0x770   :  { %1491 = vmatmul.f32.vlgmr.msra.gmra.mxu2 %v1490_v25  ;;  %1611 = vmatmul.f32.vlgmr.msrb.gmra.mxu3 %v1486_v20 }
 0x771   :  { %1731 = vmatpush.msra.mxu2 %v2166_v32  ;;  %v1642_v32 = vpop.permute.xlu2 %1641 }
 0x773   :  { %1734 = vmatpush.msra.mxu2 %v1695_v36 }
 0x775   :  { %1737 = vmatpush.msra.mxu2 %v1701_v38 }
 0x778   :  { %1589 = vmatmul.f32.vlgmr.msrb.gmra.mxu2 %v1486_v20 }
 0x7e7   :  { %v1542_v19 = vpop.f32.mrf.mxu0 }
 0x7e9   :  { %v1566_v18 = vpop.f32.mrf.mxu1 }
 0x7eb   :  { %v1518_v27 = vpop.f32.mrf.mxu3 }
 0x7f3   :  { %v1492_v17 = vpop.f32.mrf.mxu2  ;;  %v1612_v33 = vpop.f32.mrf.mxu3 }
 0x7f4   :  { %v1519_v23 = vadd.f32 %v1518_v27, %v1492_v17 }
 0x7f6   :  { %v1543_v28 = vadd.f32 %v1542_v19, %v1519_v23 }
 0x7f8   :  { %v1567_v29 = vadd.f32 %v1566_v18, %v1543_v28 }
 0x7fb   :  { %v1590_v30 = vpop.f32.mrf.mxu2 }
 0x7fc   :  { %v1591_v31 = vadd.f32 %v1590_v30, %v1567_v29 }
 0x7fe   :  { %v1613_v0 = vadd.f32 %v1612_v33, %v1591_v31 }
 0x800   :  { %1616 = vrot.lane.b32.xlu1 %v1613_v0, %s1990_s8 }
 0x808   :  { %1629 = vrot.lane.b32.xlu1 %v2035_v6, %s1989_s7  ;;  %v1704_v6 = vand.u32 4294901760, %v1703_v43 }
 0x80a   :  { %1705 = vmatpush.msrb.mxu1 %v1704_v6 }
 0x872   :  { %v1617_v44 = vpop.permute.xlu1 %1616 }
 0x873   :  { %v1619_v46 = vsel %vm298_vm1, %v2179_v45, %v1617_v44 }
 0x874   :  { %v1621_v47 = vrot.slane %v1619_v46, 4 }
 0x876   :  { %v1624_v49 = vsel %vm1623_vm2, %v963_v59, %v1621_v47 }
 0x877   :  { %v1645_v50 = vsel %vm73_vm0, %v1624_v49, 0 }
 0x878   :  { %v1667_v8 = vand.u32 4294901760, %v1645_v50 }
 0x87a   :  { %v1668_v51 = vsub.f32 %v1645_v50, %v1667_v8  ;;  %v1630_v54 = vpop.permute.xlu1 %1629 }
 0x87b   :  { %v1665_v2 = vand.u32 4294901760, %v1630_v54 }
 0x87c   :  { %v1669_v55 = vand.u32 4294901760, %v1668_v51 }
 0x87d   :  { %v1707_v56 = vsub.f32 %v1630_v54, %v1665_v2  ;;  %1666 = vmatpush.msrb.mxu0 %v1665_v2  ;;  %1766 = vmatpush.msra.mxu3 %v1665_v2 }
 0x87e   :  { %1770 = vmatmul.f32.vlgmr.msra.gmra.mxu3 %v1669_v55  ;;  %v1670_v45 = vsub.f32 %v1668_v51, %v1669_v55 }
 0x87f   :  { %1789 = vmatpush.msra.mxu0 %v1690_v34  ;;  %v1708_v58 = vand.u32 4294901760, %v1707_v56  ;;  %1740 = vmatpush.msra.mxu2 %v1707_v56 }
 0x880   :  { %1743 = vmatmul.f32.vlgmr.msra.gmra.mxu2 %v1668_v51  ;;  %v1671_v40 = vand.u32 4294901760, %v1670_v45 }
 0x881   :  { %1793 = vmatpush.msra.mxu0 %v1696_v37  ;;  %v1709_v60 = vsub.f32 %v1707_v56, %v1708_v58 }
 0x882   :  { %1672 = vmatmul.f32.vlgmr.msrb.gmra.mxu0 %v1671_v40 }
 0x883   :  { %v1710_v41 = vand.u32 4294901760, %v1709_v60  ;;  %1797 = vmatpush.msra.mxu0 %v1702_v12 }
 0x885   :  { %1711 = vmatpush.msrb.mxu1 %v1710_v41  ;;  %1801 = vmatpush.msra.mxu0 %v1708_v58 }
 0x886   :  { %1713 = vmatmul.f32.vlgmr.msrb.gmra.mxu1 %v1667_v8 }
 0x887   :  { %1820 = vmatpush.msra.mxu1 %v2163_v3 }
 0x889   :  { %1822 = vmatpush.msra.mxu1 %v1661_v26 }
 0x88a   :  { %1803 = vmatmul.f32.vlgmr.msra.gmra.mxu0 %v1667_v8 }
 0x88b   :  { %1824 = vmatpush.msra.mxu1 %v1663_v53 }
 0x88d   :  { %1826 = vmatpush.msra.mxu1 %v1665_v2 }
 0x88e   :  { %1828 = vmatmul.f32.vlgmr.msra.gmra.mxu1 %v1667_v8 }
 0x8ff   :  { %v1673_v34 = vpop.f32.mrf.mxu0 }
 0x900   :  { %v1674_v61 = vadd.f32 %v1673_v34, %v1642_v32 }
 0x901   :  { %v1771_v5 = vpop.f32.mrf.mxu3 }
 0x903   :  { %v1714_v62 = vpop.f32.mrf.mxu1  ;;  %v1744_v63 = vpop.f32.mrf.mxu2 }
 0x904   :  { %v1715_v10 = vadd.f32 %v1714_v62, %v1674_v61 }
 0x906   :  { %v1745_v4 = vadd.f32 %v1744_v63, %v1715_v10 }
 0x907   :  { %v1804_v52 = vpop.f32.mrf.mxu0 }
 0x908   :  { %v1772_v7 = vadd.f32 %v1771_v5, %v1745_v4 }
 0x90a   :  { %v1805_v3 = vadd.f32 %v1804_v52, %v1772_v7 }
 0x90b   :  { %v1829_v9 = vpop.f32.mrf.mxu1 }
 0x90c   :  { %v1830_v11 = vadd.f32 %v1829_v9, %v1805_v3 }
 0x90e   :  { %1832 = vst.msk [vmem:[#allocation8] sm:$0xff] %vm73_vm0, %v1830_v11 }
 0x90f   :  { %1843 = dma.vmem_to_hbm [thread:$0]  %s1839_s10, 128, %s1841_s13, [#allocation4]  }
 0x910   :  { %1979 = dma.done.wait [#allocation4], 128  }
 0x911   :  { %1980 = vsyncadd [#allocation4], 4294967168 }
 0x912   :  { %1848 = vsyncpa [#allocation3], 1 }
 0x913   :  { %1849 = vsyncpa [#allocation6], 1 }
 0x914   :  { %1850 = vsyncpa [#allocation4], 1 }

</bundles_post_ra>
